<compile_context>
chip_gen: v7x
topology: tpu7x:2x2x1
jax: 0.10.0
libtpu: 0.0.40
codegen_flags: <defaults>
</compile_context>

<pallas_src>
import functools

import jax
import jax.numpy as jnp
from jax.experimental import pallas as pl
from jax.experimental.pallas import tpu as pltpu


def awru_kernel(scales_ref,   # SMEM (2,)            [res_scale, x_scale]
                x_ref,        # VMEM (1, Cin, L)     flat spatial, zero-padded by `base` per side
                masks_ref,    # VMEM (k, HW)         horizontal border masks per kernel column
                w1_ref,       # VMEM (BF, k*k*Cin)   im2col-ordered conv1 weights
                b1_ref,       # VMEM (BF, 1)
                w2_ref,       # VMEM (Cout, k*k*BF)  im2col-ordered conv2 weights
                b2_ref,       # VMEM (Cout, 1)
                o_ref,        # VMEM (1, Cout, HW)   lane-dense output block
                *, H, W, k):
    p = k // 2
    HW = H * W
    base = p * W + p            # flat padding per side

    xf = x_ref[0]               # (Cin, L)
    masks = masks_ref[...]      # (k, HW)

    def shifted_planes(flat):
        # flat: (Cch, HW + 2*base).  For tap (dy, dx) the shifted plane is a
        # static lane slice at offset dy*W + dx; vertical out-of-image reads
        # land in the zero padding, horizontal ones are zeroed by the masks.
        planes = []
        for dy in range(k):
            for dx in range(k):
                s = dy * W + dx                       # static offset
                plane = flat[:, s:s + HW]             # (Cch, HW)
                if dx != p:                           # border columns only
                    plane = plane * masks[dx:dx + 1, :]
                planes.append(plane)
        return planes

    # ---- conv1 + bias + ReLU: one (BF, k*k*Cin) @ (k*k*Cin, HW) matmul ----
    planes1 = shifted_planes(xf)
    patches1 = jnp.concatenate(planes1, axis=0)       # (k*k*Cin, HW)
    x_center = planes1[p * k + p]                     # (Cin, HW) == original x
    h1 = jnp.dot(w1_ref[...], patches1,
                 preferred_element_type=jnp.float32)  # (BF, HW)
    h1 = jnp.maximum(h1 + b1_ref[...], 0.0)

    # ---- conv2 + bias: pad-as-value, one (Cout, k*k*BF) @ (k*k*BF, HW) ----
    zpad = jnp.zeros((h1.shape[0], base), jnp.float32)
    h1f = jnp.concatenate([zpad, h1, zpad], axis=1)   # (BF, L)
    patches2 = jnp.concatenate(shifted_planes(h1f), axis=0)   # (k*k*BF, HW)
    y = jnp.dot(w2_ref[...], patches2,
                preferred_element_type=jnp.float32) + b2_ref[...]  # (Cout, HW)

    # ---- scaled residual add; store is full-width (last dim = HW) ----
    res_scale = scales_ref[0]
    x_scale = scales_ref[1]
    o_ref[0] = (res_scale * y + x_scale * x_center).astype(o_ref.dtype)


def awru_forward(x_nchw, w1, b1, w2, b2, res_scale, x_scale):
    N, C, H, W = x_nchw.shape
    k = w1.shape[0]
    BF = w1.shape[3]
    p = k // 2
    HW = H * W
    base = p * W + p
    L = HW + 2 * base

    # Flat, lane-major spatial layout (NCHW -> (N, C, H*W) is a free reshape),
    # zero-padded by `base` on each end so every conv tap is a static slice.
    x_flat = x_nchw.reshape(N, C, HW).astype(jnp.float32)
    x_padf = jnp.pad(x_flat, ((0, 0), (0, 0), (base, base)))

    # Horizontal border masks: masks[dx] zeroes columns whose (dx - p) shift
    # would read outside the image row (vertical handled by the flat padding).
    cols = jnp.arange(HW, dtype=jnp.int32) % W
    masks = jnp.stack(
        [((cols + (dx - p) >= 0) & (cols + (dx - p) <= W - 1)).astype(jnp.float32)
         for dx in range(k)], axis=0)                                # (k, HW)

    # im2col-ordered weights: row index = (dy*k + dx)*Cin + ci.
    w1m = jnp.transpose(w1.reshape(k * k * C, BF)).astype(jnp.float32)   # (BF, k*k*C)
    w2m = jnp.transpose(w2.reshape(k * k * BF, C)).astype(jnp.float32)   # (C, k*k*BF)
    b1c = b1.reshape(BF, 1).astype(jnp.float32)
    b2c = b2.reshape(C, 1).astype(jnp.float32)
    scales = jnp.concatenate([res_scale, x_scale]).astype(jnp.float32)   # (2,)

    kernel = functools.partial(awru_kernel, H=H, W=W, k=k)

    out_flat = pl.pallas_call(
        kernel,
        out_shape=jax.ShapeDtypeStruct((N, C, HW), jnp.float32),
        grid_spec=pltpu.PrefetchScalarGridSpec(
            num_scalar_prefetch=1,                    # `scales` -> SMEM
            grid=(N,),
            in_specs=[
                pl.BlockSpec((1, C, L), lambda n, s: (n, 0, 0)),
                pl.BlockSpec((k, HW), lambda n, s: (0, 0)),
                pl.BlockSpec((BF, k * k * C), lambda n, s: (0, 0)),
                pl.BlockSpec((BF, 1), lambda n, s: (0, 0)),
                pl.BlockSpec((C, k * k * BF), lambda n, s: (0, 0)),
                pl.BlockSpec((C, 1), lambda n, s: (0, 0)),
            ],
            out_specs=pl.BlockSpec((1, C, HW), lambda n, s: (n, 0, 0)),
        ),
        compiler_params=pltpu.CompilerParams(
            dimension_semantics=("parallel",),        # shard batch over TCs on v7x
            vmem_limit_bytes=32 * 1024 * 1024),
    )(scales, x_padf, masks, w1m, b1c, w2m, b2c)

    return out_flat.reshape(N, C, H, W)


def awru_reference(x_nchw, w1, b1, w2, b2, res_scale, x_scale):
    """Pure-JAX reference (lax conv) for correctness checking."""
    x_nhwc = jnp.transpose(x_nchw, (0, 2, 3, 1)).astype(jnp.float32)

    def conv(x, w, b):
        y = jax.lax.conv_general_dilated(
            x, w, window_strides=(1, 1), padding="SAME",
            dimension_numbers=("NHWC", "HWIO", "NHWC"))
        return y + b[None, None, None, :]

    h = jnp.maximum(conv(x_nhwc, w1, b1), 0.0)
    y = conv(h, w2, b2)
    out = res_scale[0] * y + x_scale[0] * x_nhwc
    return jnp.transpose(out, (0, 3, 1, 2))


if __name__ == "__main__":
    # Module hyperparameters (small synthetic sizes)
    n_feats = 4          # Cin = Cout
    block_feats = 8      # hidden channels of the body
    kernel_size = 3
    N, H, W = 2, 16, 16

    key = jax.random.PRNGKey(0)
    kx, k1, k2, k3, k4 = jax.random.split(key, 5)

    # Deterministic parameter init (weight-norm folds into plain weights).
    w1 = 0.1 * jax.random.normal(k1, (kernel_size, kernel_size, n_feats, block_feats), jnp.float32)
    b1 = 0.1 * jax.random.normal(k2, (block_feats,), jnp.float32)
    w2 = 0.1 * jax.random.normal(k3, (kernel_size, kernel_size, block_feats, n_feats), jnp.float32)
    b2 = 0.1 * jax.random.normal(k4, (n_feats,), jnp.float32)
    res_scale = jnp.array([1.0], jnp.float32)   # Scale(1)
    x_scale = jnp.array([1.0], jnp.float32)     # Scale(1)

    x = jax.random.normal(kx, (N, n_feats, H, W), jnp.float32)

    out = awru_forward(x, w1, b1, w2, b2, res_scale, x_scale)
    out = jax.block_until_ready(out)

    ref = awru_reference(x, w1, b1, w2, b2, res_scale, x_scale)
    assert out.shape == (N, n_feats, H, W)
    assert jnp.allclose(out, ref, atol=1e-4, rtol=1e-4), \
        f"max abs err = {jnp.max(jnp.abs(out - ref))}"

    print("KERNEL_OK")
</pallas_src>

<mosaic_0001>
module attributes {stable_mosaic.version = 11 : i64} {
  func.func @awru_kernel(%arg0: i32, %arg1: memref<2xf32, #tpu.memory_space<smem>>, %arg2: memref<1x4x290xf32, #tpu.memory_space<vmem>>, %arg3: memref<3x256xf32, #tpu.memory_space<vmem>>, %arg4: memref<8x36xf32, #tpu.memory_space<vmem>>, %arg5: memref<8x1xf32, #tpu.memory_space<vmem>>, %arg6: memref<4x72xf32, #tpu.memory_space<vmem>>, %arg7: memref<4x1xf32, #tpu.memory_space<vmem>>, %arg8: memref<1x4x256xf32, #tpu.memory_space<vmem>>) attributes {dimension_semantics = [#tpu.dimension_semantics<parallel>], iteration_bounds = array<i64: 2>, scalar_prefetch = 1 : i64, scratch_operands = 0 : i64, tpu.core_type = #tpu.core_type<tc>, window_params = [{transform_indices = @transform_0, window_bounds = array<i64: 1, 4, 290>}, {pipeline_mode = #tpu.pipeline_mode<synchronous>, transform_indices = @transform_1, window_bounds = array<i64: 3, 256>}, {pipeline_mode = #tpu.pipeline_mode<synchronous>, transform_indices = @transform_2, window_bounds = array<i64: 8, 36>}, {pipeline_mode = #tpu.pipeline_mode<synchronous>, transform_indices = @transform_3, window_bounds = array<i64: 8, 1>}, {pipeline_mode = #tpu.pipeline_mode<synchronous>, transform_indices = @transform_4, window_bounds = array<i64: 4, 72>}, {pipeline_mode = #tpu.pipeline_mode<synchronous>, transform_indices = @transform_5, window_bounds = array<i64: 4, 1>}, {transform_indices = @transform_6, window_bounds = array<i64: 1, 4, 256>}]} {
    %c0 = arith.constant 0 : index
    %c0_0 = arith.constant 0 : index
    %c0_1 = arith.constant 0 : index
    %0 = vector.load %arg2[%c0, %c0_0, %c0_1] : memref<1x4x290xf32, #tpu.memory_space<vmem>>, vector<1x4x290xf32>
    %1 = vector.shape_cast %0 : vector<1x4x290xf32> to vector<4x290xf32>
    %c0_2 = arith.constant 0 : index
    %c0_3 = arith.constant 0 : index
    %2 = vector.load %arg3[%c0_2, %c0_3] : memref<3x256xf32, #tpu.memory_space<vmem>>, vector<3x256xf32>
    %3 = vector.extract_strided_slice %1 {offsets = [0, 0], sizes = [4, 256], strides = [1, 1]} : vector<4x290xf32> to vector<4x256xf32>
    %4 = vector.extract_strided_slice %2 {offsets = [0, 0], sizes = [1, 256], strides = [1, 1]} : vector<3x256xf32> to vector<1x256xf32>
    %5 = vector.broadcast %4 : vector<1x256xf32> to vector<4x256xf32>
    %6 = arith.mulf %3, %5 : vector<4x256xf32>
    %7 = vector.extract_strided_slice %1 {offsets = [0, 1], sizes = [4, 256], strides = [1, 1]} : vector<4x290xf32> to vector<4x256xf32>
    %8 = vector.extract_strided_slice %1 {offsets = [0, 2], sizes = [4, 256], strides = [1, 1]} : vector<4x290xf32> to vector<4x256xf32>
    %9 = vector.extract_strided_slice %2 {offsets = [2, 0], sizes = [1, 256], strides = [1, 1]} : vector<3x256xf32> to vector<1x256xf32>
    %10 = vector.broadcast %9 : vector<1x256xf32> to vector<4x256xf32>
    %11 = arith.mulf %8, %10 : vector<4x256xf32>
    %12 = vector.extract_strided_slice %1 {offsets = [0, 16], sizes = [4, 256], strides = [1, 1]} : vector<4x290xf32> to vector<4x256xf32>
    %13 = vector.extract_strided_slice %2 {offsets = [0, 0], sizes = [1, 256], strides = [1, 1]} : vector<3x256xf32> to vector<1x256xf32>
    %14 = vector.broadcast %13 : vector<1x256xf32> to vector<4x256xf32>
    %15 = arith.mulf %12, %14 : vector<4x256xf32>
    %16 = vector.extract_strided_slice %1 {offsets = [0, 17], sizes = [4, 256], strides = [1, 1]} : vector<4x290xf32> to vector<4x256xf32>
    %17 = vector.extract_strided_slice %1 {offsets = [0, 18], sizes = [4, 256], strides = [1, 1]} : vector<4x290xf32> to vector<4x256xf32>
    %18 = vector.extract_strided_slice %2 {offsets = [2, 0], sizes = [1, 256], strides = [1, 1]} : vector<3x256xf32> to vector<1x256xf32>
    %19 = vector.broadcast %18 : vector<1x256xf32> to vector<4x256xf32>
    %20 = arith.mulf %17, %19 : vector<4x256xf32>
    %21 = vector.extract_strided_slice %1 {offsets = [0, 32], sizes = [4, 256], strides = [1, 1]} : vector<4x290xf32> to vector<4x256xf32>
    %22 = vector.extract_strided_slice %2 {offsets = [0, 0], sizes = [1, 256], strides = [1, 1]} : vector<3x256xf32> to vector<1x256xf32>
    %23 = vector.broadcast %22 : vector<1x256xf32> to vector<4x256xf32>
    %24 = arith.mulf %21, %23 : vector<4x256xf32>
    %25 = vector.extract_strided_slice %1 {offsets = [0, 33], sizes = [4, 256], strides = [1, 1]} : vector<4x290xf32> to vector<4x256xf32>
    %26 = vector.extract_strided_slice %1 {offsets = [0, 34], sizes = [4, 256], strides = [1, 1]} : vector<4x290xf32> to vector<4x256xf32>
    %27 = vector.extract_strided_slice %2 {offsets = [2, 0], sizes = [1, 256], strides = [1, 1]} : vector<3x256xf32> to vector<1x256xf32>
    %28 = vector.broadcast %27 : vector<1x256xf32> to vector<4x256xf32>
    %29 = arith.mulf %26, %28 : vector<4x256xf32>
    %30 = tpu.concatenate %6, %7, %11, %15, %16, %20, %24, %25, %29 in 0 : vector<4x256xf32>, vector<4x256xf32>, vector<4x256xf32>, vector<4x256xf32>, vector<4x256xf32>, vector<4x256xf32>, vector<4x256xf32>, vector<4x256xf32>, vector<4x256xf32> -> vector<36x256xf32>
    %c0_4 = arith.constant 0 : index
    %c0_5 = arith.constant 0 : index
    %31 = vector.load %arg4[%c0_4, %c0_5] : memref<8x36xf32, #tpu.memory_space<vmem>>, vector<8x36xf32>
    %cst = arith.constant dense<0.000000e+00> : vector<8x256xf32>
    %32 = tpu.matmul %31, %30, %cst {dimension_numbers = #tpu.dot_dimension_numbers<[1], [0], [0], [1], [0, 0, 1, 1], [], []>} : vector<8x36xf32>, vector<36x256xf32>, vector<8x256xf32> -> vector<8x256xf32>
    %c0_6 = arith.constant 0 : index
    %c0_7 = arith.constant 0 : index
    %33 = vector.load %arg5[%c0_6, %c0_7] : memref<8x1xf32, #tpu.memory_space<vmem>>, vector<8x1xf32>
    %34 = vector.broadcast %33 : vector<8x1xf32> to vector<8x256xf32>
    %35 = arith.addf %32, %34 : vector<8x256xf32>
    %cst_8 = arith.constant 0.000000e+00 : f32
    %36 = vector.broadcast %cst_8 : f32 to vector<8x256xf32>
    %37 = arith.maximumf %35, %36 : vector<8x256xf32>
    %cst_9 = arith.constant 0.000000e+00 : f32
    %38 = vector.broadcast %cst_9 : f32 to vector<8x17xf32>
    %39 = tpu.concatenate %38, %37, %38 in 1 : vector<8x17xf32>, vector<8x256xf32>, vector<8x17xf32> -> vector<8x290xf32>
    %40 = vector.extract_strided_slice %39 {offsets = [0, 0], sizes = [8, 256], strides = [1, 1]} : vector<8x290xf32> to vector<8x256xf32>
    %41 = vector.extract_strided_slice %2 {offsets = [0, 0], sizes = [1, 256], strides = [1, 1]} : vector<3x256xf32> to vector<1x256xf32>
    %42 = vector.broadcast %41 : vector<1x256xf32> to vector<8x256xf32>
    %43 = arith.mulf %40, %42 : vector<8x256xf32>
    %44 = vector.extract_strided_slice %39 {offsets = [0, 1], sizes = [8, 256], strides = [1, 1]} : vector<8x290xf32> to vector<8x256xf32>
    %45 = vector.extract_strided_slice %39 {offsets = [0, 2], sizes = [8, 256], strides = [1, 1]} : vector<8x290xf32> to vector<8x256xf32>
    %46 = vector.extract_strided_slice %2 {offsets = [2, 0], sizes = [1, 256], strides = [1, 1]} : vector<3x256xf32> to vector<1x256xf32>
    %47 = vector.broadcast %46 : vector<1x256xf32> to vector<8x256xf32>
    %48 = arith.mulf %45, %47 : vector<8x256xf32>
    %49 = vector.extract_strided_slice %39 {offsets = [0, 16], sizes = [8, 256], strides = [1, 1]} : vector<8x290xf32> to vector<8x256xf32>
    %50 = vector.extract_strided_slice %2 {offsets = [0, 0], sizes = [1, 256], strides = [1, 1]} : vector<3x256xf32> to vector<1x256xf32>
    %51 = vector.broadcast %50 : vector<1x256xf32> to vector<8x256xf32>
    %52 = arith.mulf %49, %51 : vector<8x256xf32>
    %53 = vector.extract_strided_slice %39 {offsets = [0, 17], sizes = [8, 256], strides = [1, 1]} : vector<8x290xf32> to vector<8x256xf32>
    %54 = vector.extract_strided_slice %39 {offsets = [0, 18], sizes = [8, 256], strides = [1, 1]} : vector<8x290xf32> to vector<8x256xf32>
    %55 = vector.extract_strided_slice %2 {offsets = [2, 0], sizes = [1, 256], strides = [1, 1]} : vector<3x256xf32> to vector<1x256xf32>
    %56 = vector.broadcast %55 : vector<1x256xf32> to vector<8x256xf32>
    %57 = arith.mulf %54, %56 : vector<8x256xf32>
    %58 = vector.extract_strided_slice %39 {offsets = [0, 32], sizes = [8, 256], strides = [1, 1]} : vector<8x290xf32> to vector<8x256xf32>
    %59 = vector.extract_strided_slice %2 {offsets = [0, 0], sizes = [1, 256], strides = [1, 1]} : vector<3x256xf32> to vector<1x256xf32>
    %60 = vector.broadcast %59 : vector<1x256xf32> to vector<8x256xf32>
    %61 = arith.mulf %58, %60 : vector<8x256xf32>
    %62 = vector.extract_strided_slice %39 {offsets = [0, 33], sizes = [8, 256], strides = [1, 1]} : vector<8x290xf32> to vector<8x256xf32>
    %63 = vector.extract_strided_slice %39 {offsets = [0, 34], sizes = [8, 256], strides = [1, 1]} : vector<8x290xf32> to vector<8x256xf32>
    %64 = vector.extract_strided_slice %2 {offsets = [2, 0], sizes = [1, 256], strides = [1, 1]} : vector<3x256xf32> to vector<1x256xf32>
    %65 = vector.broadcast %64 : vector<1x256xf32> to vector<8x256xf32>
    %66 = arith.mulf %63, %65 : vector<8x256xf32>
    %67 = tpu.concatenate %43, %44, %48, %52, %53, %57, %61, %62, %66 in 0 : vector<8x256xf32>, vector<8x256xf32>, vector<8x256xf32>, vector<8x256xf32>, vector<8x256xf32>, vector<8x256xf32>, vector<8x256xf32>, vector<8x256xf32>, vector<8x256xf32> -> vector<72x256xf32>
    %c0_10 = arith.constant 0 : index
    %c0_11 = arith.constant 0 : index
    %68 = vector.load %arg6[%c0_10, %c0_11] : memref<4x72xf32, #tpu.memory_space<vmem>>, vector<4x72xf32>
    %cst_12 = arith.constant dense<0.000000e+00> : vector<4x256xf32>
    %69 = tpu.matmul %68, %67, %cst_12 {dimension_numbers = #tpu.dot_dimension_numbers<[1], [0], [0], [1], [0, 0, 1, 1], [], []>} : vector<4x72xf32>, vector<72x256xf32>, vector<4x256xf32> -> vector<4x256xf32>
    %c0_13 = arith.constant 0 : index
    %c0_14 = arith.constant 0 : index
    %70 = vector.load %arg7[%c0_13, %c0_14] : memref<4x1xf32, #tpu.memory_space<vmem>>, vector<4x1xf32>
    %71 = vector.broadcast %70 : vector<4x1xf32> to vector<4x256xf32>
    %72 = arith.addf %69, %71 : vector<4x256xf32>
    %c0_15 = arith.constant 0 : index
    %73 = memref.load %arg1[%c0_15] : memref<2xf32, #tpu.memory_space<smem>>
    %c1 = arith.constant 1 : index
    %74 = memref.load %arg1[%c1] : memref<2xf32, #tpu.memory_space<smem>>
    %75 = vector.broadcast %73 : f32 to vector<4x256xf32>
    %76 = arith.mulf %75, %72 : vector<4x256xf32>
    %77 = vector.broadcast %74 : f32 to vector<4x256xf32>
    %78 = arith.mulf %77, %16 : vector<4x256xf32>
    %79 = arith.addf %76, %78 : vector<4x256xf32>
    %c0_16 = arith.constant 0 : index
    %c0_17 = arith.constant 0 : index
    %c0_18 = arith.constant 0 : index
    %80 = vector.load %arg8[%c0_16, %c0_17, %c0_18] : memref<1x4x256xf32, #tpu.memory_space<vmem>>, vector<1x4x256xf32>
    %81 = vector.shape_cast %80 : vector<1x4x256xf32> to vector<4x256xf32>
    %82 = vector.shape_cast %79 : vector<4x256xf32> to vector<1x4x256xf32>
    tpu.vector_store %arg8[%c0_16, %c0_17, %c0_18], %82 {strides = array<i32>} : memref<1x4x256xf32, #tpu.memory_space<vmem>>, vector<1x4x256xf32>,
    return
  }
  func.func @transform_0(%arg0: i32, %arg1: memref<2xf32, #tpu.memory_space<smem>>) -> (i32, i32, i32) {
    %c0_i32 = arith.constant 0 : i32
    %c0_i32_0 = arith.constant 0 : i32
    %c0_i32_1 = arith.constant 0 : i32
    return %arg0, %c0_i32, %c0_i32_0 : i32, i32, i32
  }
  func.func @transform_1(%arg0: i32, %arg1: memref<2xf32, #tpu.memory_space<smem>>) -> (i32, i32) {
    %c0_i32 = arith.constant 0 : i32
    %c0_i32_0 = arith.constant 0 : i32
    %c0_i32_1 = arith.constant 0 : i32
    return %c0_i32, %c0_i32_0 : i32, i32
  }
  func.func @transform_2(%arg0: i32, %arg1: memref<2xf32, #tpu.memory_space<smem>>) -> (i32, i32) {
    %c0_i32 = arith.constant 0 : i32
    %c0_i32_0 = arith.constant 0 : i32
    %c0_i32_1 = arith.constant 0 : i32
    return %c0_i32, %c0_i32_0 : i32, i32
  }
  func.func @transform_3(%arg0: i32, %arg1: memref<2xf32, #tpu.memory_space<smem>>) -> (i32, i32) {
    %c0_i32 = arith.constant 0 : i32
    %c0_i32_0 = arith.constant 0 : i32
    %c0_i32_1 = arith.constant 0 : i32
    return %c0_i32, %c0_i32_0 : i32, i32
  }
  func.func @transform_4(%arg0: i32, %arg1: memref<2xf32, #tpu.memory_space<smem>>) -> (i32, i32) {
    %c0_i32 = arith.constant 0 : i32
    %c0_i32_0 = arith.constant 0 : i32
    %c0_i32_1 = arith.constant 0 : i32
    return %c0_i32, %c0_i32_0 : i32, i32
  }
  func.func @transform_5(%arg0: i32, %arg1: memref<2xf32, #tpu.memory_space<smem>>) -> (i32, i32) {
    %c0_i32 = arith.constant 0 : i32
    %c0_i32_0 = arith.constant 0 : i32
    %c0_i32_1 = arith.constant 0 : i32
    return %c0_i32, %c0_i32_0 : i32, i32
  }
  func.func @transform_6(%arg0: i32, %arg1: memref<2xf32, #tpu.memory_space<smem>>) -> (i32, i32, i32) {
    %c0_i32 = arith.constant 0 : i32
    %c0_i32_0 = arith.constant 0 : i32
    %c0_i32_1 = arith.constant 0 : i32
    return %arg0, %c0_i32, %c0_i32_0 : i32, i32, i32
  }
}

</mosaic_0001>

<bundles_post_ra>
// kernel: tpu_custom_call.1
= control target key start
LH: loop header
LB: loop body
LE: loop exit
PB: predicated region body
PF: predicated region fallthrough
CT: control target
= control target key end

     0   :  { %s1654_s0 = inlined_call_operand.vmem [shape: f32[2], index: 0, kind: input, shape index: {}]   ;;  %s1655_s1 = inlined_call_operand.hbm [shape: f32[2,4,290], index: 1, kind: input, shape index: {}]   ;;  %s1656_s2 = inlined_call_operand.vmem [shape: f32[3,256], index: 2, kind: input, shape index: {}]   ;;  %s1657_s3 = inlined_call_operand.vmem [shape: f32[8,36], index: 3, kind: input, shape index: {}]   ;;  %s1658_s4 = inlined_call_operand.vmem [shape: f32[8,1], index: 4, kind: input, shape index: {}]   ;;  %s1659_s5 = inlined_call_operand.vmem [shape: f32[4,72], index: 5, kind: input, shape index: {}]   ;;  %s1660_s6 = inlined_call_operand.vmem [shape: f32[4,1], index: 6, kind: input, shape index: {}]   ;;  %s1661_s7 = inlined_call_operand.hbm [shape: f32[2,4,256], index: 7, kind: output, shape index: {}]  }
   0x1   :  { %s12_s26 = sshll.u32 %s1654_s0, 4  ;;  %s13_s26 = int_to_ptr.vmem [resolvable:$true] %s12_s26 }
   0x2   :  { %s1120_s27 = scalar_lea.vmem %s13_s26, 16  ;;  %p1125_p1 = scmp.lt.s32.totalorder %s13_s26, %s13_s26 }
   0x3   :  { %p1121_p0 = scmp.ne.s32.totalorder %s13_s26, %s1120_s27  ;;  %p1126_p2 = scmp.lt.s32.totalorder %s1120_s27, %s1120_s27 }
   0x5   :  { %p1127_p3 = por %p1126_p2, %p1125_p1 }
   0x7   :  { %p1128_p4 = pnand %p1127_p3, %p1121_p0 }
   0x9   :  { %1131 = shalt.err (!%p1128_p4)  }
   0xa   :  { %s1232_s28 = smov [#allocation3]  }
   0xb   :  { %15 = dma.vmem_to_smem %s13_s26, 16, %s1232_s28, [#allocation2] }
   0xc   :  { %1206 = dma.done.wait [#allocation2], 16 }
   0xd   :  { %1207 = vsyncadd [#allocation2], 4294967280 }
   0xe   :  { %17 = sfence }
   0xf   :  { %18 = vsyncpa [#allocation5], 0 }
  0x10   :  { %20 = vsyncpa [#allocation5 + $0x1], 0 }
  0x11   :  { %21 = vsyncpa [#allocation6], 0 }
  0x12   :  { %23 = vsyncpa [#allocation6 + $0x1], 0  ;;  %s1294_s29 = smov 0   ;;  %s1296_s0 = smov 0  }
  0x13   :  { %s1298_s30 = smov 0   ;;  %s1300_s8 = smov 0  }
  0x14 LB: > { %s1315_s9 = sadd.s32 4294967295, %s1230_s8   ;;  %s938_s10 = sadd.s32 4294967294, %s1230_s8   ;;  %s1230_s8 = sphi %s1300_s8, %s1678_s8   ;;  %s1226_s30 = sphi %s1298_s30, %s1677_s30   ;;  %s1222_s0 = sphi %s1296_s0, %s1676_s0   ;;  %s1218_s29 = sphi %s1294_s29, %s1675_s29  }
  0x15   : > { %s1319_s11 = sadd.s32 1, %s1230_s8   ;;  %s36_s12 = sadd.s32 1, %s1226_s30 }
  0x16   : > { %s33_s13 = ssub.s32 %s1230_s8, %s1319_s11  ;;  %p43_p5 = scmp.ne.s32.totalorder %s1226_s30, %s1222_s0 }
  0x17   : > { %p34_p6 = scmp.eq.s32.totalorder %s33_s13, 0  ;;  %p44_p7 = scmp.eq.s32.totalorder %s1230_s8, 0 }
  0x18   : > { %p49_p8 = scmp.ne.s32.totalorder %s1222_s0, %s1218_s29  ;;  %p50_p9 = scmp.eq.s32.totalorder %s1315_s9, 0 }
  0x19   : > { %s1331_s14 = scalar_select %p34_p6, %s1226_s30, %s36_s12  }
  0x1a   : > { %p45_p10 = por %p44_p7, %p43_p5  ;;  %p1333_p11 = por %p50_p9, %p49_p8 }
  0x1b   : > { %p178_p12 = scmp.eq.s32.totalorder %s1315_s9, 1  ;;  %p184_p13 = scmp.eq.s32.totalorder %s938_s10, 1 }
  0x1c   : > { %p994_p1 = scmp.lt.s32.totalorder %s1230_s8, 2  ;;  %s219_s18 = sand.u32 1, %s1226_s30  }
  0x1d   : > { %p1340_p2 = por %p178_p12, %p43_p5  ;;  %p1344_p3 = por %p184_p13, %p49_p8 }
  0x1e   : > { %s980_s19 = smul.u32 192, %s1230_s8  ;;  %p1355_p4 = pnand %p994_p1, %p45_p10 }
  0x1f   : > { %s1666_s16 = scalar_select %p1340_p2, 1, 0 }
  0x20   : > { %s1667_s17 = scalar_select %p1344_p3, 1, 0 }
  0x21   : > { %s979_s20 = smul.u32 12, %s219_s18  ;;  %s1353_s23 = scalar_lea.hbm %s1655_s1, %s980_s19 }
  0x22   : > { %s220_s27 = scalar_lea.sflag [#allocation5], %s219_s18  ;;  %s1132_s28 = scalar_lea.hbm %s1353_s23, 192 }
  0x23   : > { %s223_s25 = scalar_lea.vmem [#allocation4], %s979_s20  ;;  %p1133_p7 = scmp.ne.s32.totalorder %s1353_s23, %s1132_s28 }
  0x24   : > { %s231_s26 = sshll.u32 %s223_s25, 4  ;;  %p1134_p8 = pneg %p1355_p4  ;;  %s1360_s26 = int_to_ptr.vmem [resolvable:$true] %s231_s26 }
  0x25   : > { %s1137_s13 = scalar_lea.hbm %s1655_s1, 384  ;;  %p1138_p12 = scmp.lt.u32.totalorder %s1353_s23, %s1655_s1 }
  0x26   : > { %p1135_p9 = pnand %p1134_p8, %p1133_p7  ;;  %p1139_p13 = scmp.lt.u32.totalorder %s1137_s13, %s1132_s28 }
  0x27   : > { %p1141_p0 = scmp.lt.u32.totalorder %s1132_s28, %s1353_s23 }
  0x28   : > { %p1136_p10 = pneg %p1135_p9  ;;  %p1140_p1 = por %p1139_p13, %p1138_p12 }
  0x2a   : > { %p1142_p5 = por %p1141_p0, %p1140_p1 }
  0x2c   : > { %p1143_p6 = pnand %p1142_p5, %p1136_p10 }
  0x2e   : > { %1146 = shalt.err (!%p1143_p6)
}
  0x2f   : > { %s1147_s18 = scalar_lea.vmem %s1360_s26, 192  ;;  %s1233_s20 = smov [#allocation4]  }
  0x30   : > { %p1148_p7 = scmp.ne.s32.totalorder %s1360_s26, %s1147_s18  ;;  %s1152_s22 = sshll.u32 %s1233_s20, 4  ;;  %s1153_s22 = int_to_ptr.vmem [resolvable:$false] %s1152_s22 }
  0x31   : > { %s1154_s25 = scalar_lea.vmem %s1153_s22, 384  ;;  %p1155_p2 = scmp.lt.s32.totalorder %s1360_s26, %s1153_s22 }
  0x32   : > { %p1150_p9 = pnand %p1148_p7, %p1134_p8  ;;  %p1156_p12 = scmp.lt.s32.totalorder %s1154_s25, %s1147_s18 }
  0x34   : > { %p1151_p3 = pneg %p1150_p9  ;;  %p1157_p13 = por %p1156_p12, %p1155_p2 }
  0x36   : > { %p1158_p0 = pnand %p1157_p13, %p1151_p3 }
  0x38   : > { %1161 = shalt.err (!%p1158_p0)
}
  0x39   : > { %989 = dma.hbm_to_vmem [thread:$0]  (!%p1355_p4), %s1353_s23, 192, %s1360_s26, %s220_s27  }
  0x3a   : > { %p1669_p5 = scmp.lt.s32.totalorder %s1230_s8, 3  ;;  %p1670_p6 = scmp.ge.s32.totalorder %s1230_s8, 1 }
  0x3c   : > { %p237_p8 = pnand %p1670_p6, %p1669_p5 }
  0x3d   : > { %s1393_s28 = sand.u32 (!%p237_p8), 1, %s1222_s0  }
  0x3e   : > { %240 = sbr.rel (%p237_p8) target bundleno = 1068 (0x42c), region = 44  ;;  %s243_s12 = scalar_lea.sflag (!%p237_p8), [#allocation5], %s1393_s28 }
  0x3f   : > { %s981_s10 = smul.u32 (!%p237_p8), 12, %s1393_s28 }
  0x41   : > { %s246_s13 = scalar_lea.vmem (!%p237_p8), [#allocation4], %s981_s10 }
  0x45   : > { %1209 = dma.done.wait (%p1333_p11), %s243_s12, 192  }
  0x46   : > { %1211 = vsyncadd (%p1333_p11), %s243_s12, 4294967104  ;;  %v279_v0 = vlaneseq  ;;  %v277_v6 = vld [vmem:[%s1656_s2] sm:$0x77]  ;;  %v1412_v15 = vld [vmem:[%s246_s13 + $0x8] sm:$0xf]  ;;  %s1234_s15 = smov 2  }
  0x47   : > { %s1235_s26 = smov 32   ;;  %v374_v18 = vcombine.low %v1412_v15, %v1412_v15  ;;  %v1425_v19 = vld [vmem:[%s246_s13] sm:$0xff]  ;;  %s1236_s27 = smov 18   ;;  %vm326_vm0 = vcmask 15360   ;;  %vm353_vm1 = vcmask 261120   ;;  %vm344_vm2 = vcmask 146432  }
  0x48   : > { %v280_v1 = vshrl.u32 %v279_v0, 7  ;;  %s1237_s19 = smov 16   ;;  %v415_v21 = vcombine.high %v1425_v19, %v1425_v19  ;;  %s1238_s21 = smov 34   ;;  %v1438_v23 = vcombine.low %v1425_v19, %v1425_v19  ;;  %vm335_vm3 = vcmask 130048   ;;  %v489_v62 = vld [vmem:[%s1658_s4] sm:$0xff] }
  0x49   : > { %v1045_v20 = vpack.i.bf16 %v374_v18, %v1425_v19  ;;  %s1239_s18 = smov 127   ;;  %s1240_s20 = smov 111   ;;  %vm362_vm4 = vcmask 277504   ;;  %v1247_v59 = vmov 0.0   ;;  %v1248_v60 = vmov 0  }
  0x4a   : > { %v304_v2 = vsub.s32 2, %v280_v1  ;;  %v308_v3 = vsub.s32 6, %v280_v1  ;;  %v281_v4 = vsub.s32 0, %v280_v1  ;;  %v285_v5 = vsub.s32 4, %v280_v1  ;;  %s1241_s22 = smov 95   ;;  %s1242_s25 = smov 126   ;;  %567 = vmatprep.mubr.f32.mxu0 %v1247_v59  ;;  %818 = vmatprep.mubr.f32.mxu1 %v1247_v59 }
  0x4b   : > { %v1050_v22 = vpack.i.bf16 %v1412_v15, %v415_v21  ;;  %s1663_s10 = smov 96   ;;  %s1244_s12 = smov 110   ;;  %1080 = vset.pattern.permute.xlu0 %v1248_v60  ;;  %1116 = vset.pattern.permute.xlu1 %v1248_v60  ;;  %vm381_vm5 = vcmask 1039360   ;;  %vm410_vm6 = vcmask 916480   ;;  %vm479_vm7 = vcmask 1043456  }
  0x4c   : > { %v305_v7 = vrot.slane %v277_v6, %v304_v2  ;;  %v309_v8 = vrot.slane %v277_v6, %v308_v3  ;;  %v282_v9 = vrot.slane %v277_v6, %v281_v4  ;;  %v286_v10 = vrot.slane %v277_v6, %v285_v5  ;;  %s1245_s13 = smov 112   ;;  %s1246_s23 = smov 94  }
  0x4d   : > { %vm462_vm8 = vcmask 777216   ;;  %vm395_vm9 = vcmask 1031168   ;;  %vm437_vm10 = vcmask 900096   ;;  %vm451_vm11 = vcmask 785408   ;;  %s1249_s24 = smov 17   ;;  %p1672_p2 = scmp.ne.s32.totalorder %s1666_s16, 0 }
  0x4e   : > { %v1404_v11 = vrot.slane %v305_v7, %v304_v2  ;;  %v1406_v12 = vrot.slane %v309_v8, %v304_v2  ;;  %v1408_v13 = vrot.slane %v282_v9, %v281_v4  ;;  %v1410_v14 = vrot.slane %v286_v10, %v281_v4 }
  0x4f   : > { %vm422_vm12 = vcmask 908288   ;;  %vm476_vm13 = vcmask 769024   ;;  %vm495_vm14 = vcmask 293888   ;;  %vm582_vm15 = vcmask 138240  }
  0x50   : > { %v322_v16 = vcombine.low %v1404_v11, %v1406_v12  ;;  %v1418_v17 = vcombine.low %v1408_v13, %v1410_v14 }
  0x52   : > { %323 = vrot.lane.b32.xlu0 %v322_v16, %s1234_s15  ;;  %350 = vrot.lane.b32.xlu1 %v1418_v17, %s1235_s26  ;;  %v301_v6 = vmul.f32 %v1418_v17, %v1425_v19 }
  0x56   : > { %341 = vrot.lane.b32.xlu1 %v322_v16, %s1236_s27  ;;  %332 = vrot.lane.b32.xlu0 %v1418_v17, %s1237_s19 }
  0x5a   : > { %359 = vrot.lane.b32.xlu0 %v322_v16, %s1238_s21  ;;  %1046 = vrot.lane.b32.xlu1 %v1045_v20, %s1239_s18  ;;  %v369_v16 = vcombine.high %v301_v6, %v301_v6 }
  0x5e   : > { %1051 = vrot.lane.b32.xlu1 %v1050_v22, %s1240_s20  ;;  %375 = vrot.lane.b32.xlu0 %v1438_v23, %s1239_s18 }
  0x62   : > { %416 = vrot.lane.b32.xlu1 %v1425_v19, %s1240_s20  ;;  %1056 = vrot.lane.b32.xlu0 %v1045_v20, %s1241_s22 }
  0xc4   : > { %v324_v24 = vpop.permute.xlu0 %323  ;;  %v351_v25 = vpop.permute.xlu1 %350 }
  0xc5   : > { %v325_v26 = vrot.slane %v324_v24, 4  ;;  %v352_v27 = vrot.slane %v351_v25, 4 }
  0xc7   : > { %v327_v28 = vsel %vm326_vm0, %v325_v26, %v324_v24  ;;  %v354_v32 = vsel %vm353_vm1, %v352_v27, %v351_v25  ;;  %v331_v46 = vmul.f32 %v325_v26, %v1412_v15  ;;  %v358_v52 = vmul.f32 %v352_v27, %v1412_v15 }
  0xc8   : > { %v330_v29 = vmul.f32 %v327_v28, %v1425_v19  ;;  %v342_v30 = vpop.permute.xlu1 %341  ;;  %v333_v31 = vpop.permute.xlu0 %332  ;;  %v357_v39 = vmul.f32 %v354_v32, %v1425_v19 }
  0xc9   : > { %v343_v33 = vrot.slane %v342_v30, 4  ;;  %v334_v34 = vrot.slane %v333_v31, 4 }
  0xca   : > { %389 = vrot.lane.b32.xlu1 %v330_v29, %s1242_s25  ;;  %v388_v47 = vcombine.high %v330_v29, %v330_v29  ;;  %v444_v51 = vcombine.high %v357_v39, %v357_v39 }
  0xcb   : > { %v345_v35 = vsel %vm344_vm2, %v343_v33, %v342_v30  ;;  %v349_v36 = vmul.f32 %v343_v33, %v1412_v15  ;;  %v336_v37 = vsel %vm335_vm3, %v334_v34, %v333_v31  ;;  %v340_v38 = vmul.f32 %v334_v34, %v1412_v15 }
  0xcc   : > { %v348_v40 = vmul.f32 %v345_v35, %v1425_v19  ;;  %v339_v41 = vmul.f32 %v336_v37, %v1425_v19  ;;  %v360_v42 = vpop.permute.xlu0 %359  ;;  %v1070_v54 = vpack.i.bf16 %v331_v46, %v388_v47  ;;  %v1075_v55 = vpack.i.bf16 %v358_v52, %v444_v51  ;;  %v1047_v63 = vpop.permute.xlu1 %1046 }
  0xcd   : > { %v430_v43 = vcombine.low %v349_v36, %v349_v36  ;;  %v403_v44 = vcombine.low %v340_v38, %v340_v38  ;;  %v361_v45 = vrot.slane %v360_v42, 4  ;;  %v1049_v7 = vunpack.i.h.bf16 %v1047_v63 }
  0xce   : > { %445 = vrot.lane.b32.xlu1 %v357_v39, %s1663_s10  ;;  %v402_v57 = vcombine.low %v339_v41, %v339_v41  ;;  %v429_v58 = vcombine.low %v348_v40, %v348_v40  ;;  %v1048_v8 = vunpack.i.l.bf16 %v1047_v63 }
  0xcf   : > { %v1065_v48 = vpack.i.bf16 %v430_v43, %v348_v40  ;;  %v1060_v49 = vpack.i.bf16 %v403_v44, %v339_v41  ;;  %v363_v50 = vsel %vm362_vm4, %v361_v45, %v360_v42  ;;  %v367_v61 = vmul.f32 %v361_v45, %v1412_v15 }
  0xd0   : > { %v366_v53 = vmul.f32 %v363_v50, %v1425_v19  ;;  %v1489_v0 = vpop.permute.xlu1 %1051  ;;  %v376_v2 = vpop.permute.xlu0 %375 }
  0xd1   : > { %1066 = vrot.lane.b32.xlu0 %v1065_v48, %s1244_s12  ;;  %v1054_v29 = vunpack.i.h.bf16 %v1489_v0  ;;  %v1053_v30 = vunpack.i.l.bf16 %v1489_v0  ;;  %v382_v33 = vsel %vm381_vm5, %v376_v2, %v1048_v8  ;;  %v488_v0 = vld [vmem:[%s1657_s3] sm:$0xff] }
  0xd2   : > { %1061 = vrot.lane.b32.xlu1 %v1060_v49, %s1245_s13  ;;  %v469_v56 = vcombine.high %v366_v53, %v366_v53  ;;  %v480_v46 = vsel %vm479_vm7, %v301_v6, %v382_v33 }
  0xd3   : > { %v424_v45 = vsel %vm422_vm12, %v1053_v30, %v1054_v29 }
  0xd4   : > { %v417_v1 = vpop.permute.xlu1 %416  ;;  %v1057_v4 = vpop.permute.xlu0 %1056 }
  0xd5   : > { %1071 = vrot.lane.b32.xlu0 %v1070_v54, %s1242_s25  ;;  %v1059_v21 = vunpack.i.h.bf16 %v1057_v4  ;;  %v1058_v22 = vunpack.i.l.bf16 %v1057_v4 }
  0xd6   : > { %1076 = vrot.lane.b32.xlu1 %v1075_v55, %s1663_s10  ;;  %v423_v55 = vsel %vm422_vm12, %v417_v1, %v1053_v30 }
  0xd7   : > { %v464_v36 = vsel %vm462_vm8, %v1058_v22, %v1059_v21 }
  0xd9   : > { %404 = vrot.lane.b32.xlu0 %v402_v57, %s1245_s13 }
  0xda   : > { %472 = vrot.lane.b32.xlu1 %v469_v56, %s1246_s23 }
  0xdd   : > { %431 = vrot.lane.b32.xlu0 %v429_v58, %s1244_s12 }
  0xde   : > { %470 = vrot.lane.b32.xlu1 %v366_v53, %s1246_s23 }
  0xe1   : > { %456 = vrot.lane.b32.xlu0 %v1438_v23, %s1241_s22 }
  0xe2   : > { %593 = vrot.lane.b32.xlu1 %v1406_v12, %s1234_s15 }
  0xe5   : > { %474 = vrot.lane.b32.xlu0 %v367_v61, %s1246_s23 }
  0xe9   : > { %492 = vperm.xlu0 %1080, %v489_v62  }
  0xed   : > { %591 = vrot.lane.b32.xlu0 %v1404_v11, %s1234_s15 }
  0xf1   : > { %602 = vrot.lane.b32.xlu0 %v1408_v13, %s1237_s19 }
  0xf5   : > { %613 = vrot.lane.b32.xlu0 %v1404_v11, %s1236_s27 }
  0xf9   : > { %624 = vrot.lane.b32.xlu0 %v1408_v13, %s1235_s26 }
  0xfd   : > { %635 = vrot.lane.b32.xlu0 %v1404_v11, %s1238_s21  ;;  %v383_v11 = vsel %vm381_vm5, %v1048_v8, %v1049_v7 }
  0xfe   : > { %v481_v35 = vsel %vm479_vm7, %v369_v16, %v383_v11 }
 0x13c   : > { %v390_v3 = vpop.permute.xlu1 %389 }
 0x140   : > { %v446_v5 = vpop.permute.xlu1 %445 }
 0x143   : > { %v1067_v9 = vpop.permute.xlu0 %1066 }
 0x144   : > { %v1062_v10 = vpop.permute.xlu1 %1061  ;;  %v1069_v23 = vunpack.i.h.bf16 %v1067_v9  ;;  %v1068_v24 = vunpack.i.l.bf16 %v1067_v9 }
 0x145   : > { %v1064_v18 = vunpack.i.h.bf16 %v1062_v10  ;;  %v1063_v20 = vunpack.i.l.bf16 %v1062_v10 }
 0x146   : > { %v439_v40 = vsel %vm437_vm10, %v1068_v24, %v1069_v23 }
 0x147   : > { %v1072_v17 = vpop.permute.xlu0 %1071  ;;  %v412_v28 = vsel %vm410_vm6, %v1063_v20, %v1064_v18  ;;  %v485_v49 = vsel %vm479_vm7, %v424_v45, %v439_v40 }
 0x148   : > { %v1074_v25 = vunpack.i.h.bf16 %v1072_v17  ;;  %v1073_v26 = vunpack.i.l.bf16 %v1072_v17  ;;  %v1077_v27 = vpop.permute.xlu1 %1076 }
 0x149   : > { %v1079_v31 = vunpack.i.h.bf16 %v1077_v27  ;;  %v1078_v32 = vunpack.i.l.bf16 %v1077_v27 }
 0x14a   : > { %v397_v34 = vsel %vm395_vm9, %v1073_v26, %v1074_v25  ;;  %v396_v43 = vsel %vm395_vm9, %v390_v3, %v1073_v26 }
 0x14b   : > { %v453_v37 = vsel %vm451_vm11, %v1078_v32, %v1079_v31  ;;  %v405_v38 = vpop.permute.xlu0 %404  ;;  %v483_v39 = vsel %vm479_vm7, %v397_v34, %v412_v28  ;;  %v452_v56 = vsel %vm451_vm11, %v446_v5, %v1078_v32 }
 0x14c   : > { %v411_v41 = vsel %vm410_vm6, %v405_v38, %v1063_v20  ;;  %v955_v42 = vpack.c.bf16 %v483_v39, %v481_v35  ;;  %v487_v44 = vsel %vm479_vm7, %v453_v37, %v464_v36  ;;  %v473_v52 = vpop.permute.xlu1 %472 }
 0x14d   : > { %v482_v47 = vsel %vm479_vm7, %v396_v43, %v411_v41  ;;  %v959_v51 = vpack.c.bf16 %v487_v44, %v485_v49 }
 0x14e   : > { %956 = vmatprep.subr.bf16.mxu0 %v955_v42  ;;  %v957_v48 = vpack.c.bf16 %v482_v47, %v480_v46 }
 0x14f   : > { %v432_v50 = vpop.permute.xlu0 %431 }
 0x150   : > { %958 = vmatpush1.bf16.msra.mxu0 %v957_v48  ;;  %v438_v53 = vsel %vm437_vm10, %v432_v50, %v1068_v24  ;;  %v471_v62 = vpop.permute.xlu1 %470 }
 0x151   : > { %960 = vmatprep.subr.bf16.mxu0 %v959_v51  ;;  %v484_v58 = vsel %vm479_vm7, %v423_v55, %v438_v53  ;;  %v477_v1 = vsel %vm476_vm13, %v471_v62, %v473_v52 }
 0x153   : > { %v457_v54 = vpop.permute.xlu0 %456 }
 0x154   : > { %v463_v57 = vsel %vm462_vm8, %v457_v54, %v1058_v22  ;;  %v594_v9 = vpop.permute.xlu1 %593 }
 0x155   : > { %v486_v59 = vsel %vm479_vm7, %v452_v56, %v463_v57 }
 0x156   : > { %v961_v60 = vpack.c.bf16 %v486_v59, %v484_v58 }
 0x157   : > { %v475_v61 = vpop.permute.xlu0 %474 }
 0x158   : > { %v478_v63 = vsel %vm476_vm13, %v473_v52, %v475_v61  ;;  %962 = vmatpush1.bf16.msra.mxu0 %v961_v60  ;;  %v744_v52 = vld [vmem:[%s1660_s6] sm:$0xf] }
 0x159   : > { %944 = vmatprep.subr.msk.mxu0 %vm479_vm7, %v478_v63 }
 0x15c   : > { %945 = vmatpush1.msk.msra.mxu0 %vm479_vm7, %v477_v1 }
 0x15d   : > { %946 = vmatmul.mubr.msk.f32.vlgmr.msra.gmra.mrb[0].mxu0 %vm495_vm14, %v488_v0 }
 0x168   : > { %v493_v2 = vpop.permute.xlu0 %492 }
 0x16c   : > { %v592_v10 = vpop.permute.xlu0 %591 }
 0x16d   : > { %v595_v31 = vsel %vm326_vm0, %v592_v10, %v594_v9  ;;  %vm750_vm0 = vcmask 588800  }
 0x170   : > { %v603_v18 = vpop.permute.xlu0 %602 }
 0x174   : > { %v614_v24 = vpop.permute.xlu0 %613 }
 0x178   : > { %v625_v40 = vpop.permute.xlu0 %624 }
 0x17c   : > { %v636_v47 = vpop.permute.xlu0 %635 }
 0x230   : > { %v569_v3 = vpop.f32.mrb[0].mxu0 }
 0x231   : > { %v570_v4 = vadd.f32 %v569_v3, %v493_v2  ;;  %v571_v5 = vpop.f32.mrb[1].mxu0 }
 0x232   : > { %v572_v7 = vadd.f32 %v571_v5, %v493_v2 }
 0x233   : > { %v574_v6 = vmax.f32 %v570_v4, 0.0 }
 0x234   : > { %v575_v8 = vmax.f32 %v572_v7, 0.0 }
 0x235   : > { %578 = vrot.lane.b32.xlu1 %v574_v6, %s1249_s24 }
 0x239   : > { %580 = vrot.lane.b32.xlu1 %v575_v8, %s1249_s24 }
 0x23d   : > { %604 = vrot.lane.b32.xlu1 %v1410_v14, %s1237_s19 }
 0x241   : > { %615 = vrot.lane.b32.xlu1 %v1406_v12, %s1236_s27  ;;  %s948_s27 = sld [smem:[#allocation3 + $0x1]] }
 0x245   : > { %626 = vrot.lane.b32.xlu1 %v1410_v14, %s1235_s26  ;;  %s1671_s26 = smov 96  }
 0x247   : > { %v830_v53 = vstv %s948_s27 }
 0x248   : > { %v831_v54 = vmul.f32 %v830_v53, %v1425_v19  ;;  %v832_v57 = vmul.f32 %v830_v53, %v1412_v15 }
 0x249   : > { %637 = vrot.lane.b32.xlu1 %v1406_v12, %s1238_s21 }
 0x24a   : > { %v835_v56 = vcombine.high %v831_v54, %v831_v54 }
 0x2a7   : > { %v579_v16 = vpop.permute.xlu1 %578 }
 0x2a8   : > { %v1532_v20 = vsel %vm582_vm15, 0.0, %v579_v16 }
 0x2a9   : > { %684 = vrot.lane.b32.xlu0 %v1532_v20, %s1240_s20  ;;  %648 = vrot.lane.b32.xlu1 %v1532_v20, %s1239_s18  ;;  %v610_v21 = vmul.f32 %v603_v18, %v1532_v20  ;;  %v621_v25 = vmul.f32 %v614_v24, %v1532_v20  ;;  %v599_v35 = vmul.f32 %v592_v10, %v1532_v20 }
 0x2aa   : > { %v632_v45 = vmul.f32 %v625_v40, %v1532_v20  ;;  %v643_v55 = vmul.f32 %v636_v47, %v1532_v20  ;;  %v589_v1 = vmul.f32 %v1532_v20, %v1408_v13 }
 0x2ab   : > { %v581_v11 = vpop.permute.xlu1 %580 }
 0x2ac   : > { %v1539_v22 = vsel %vm582_vm15, %v579_v16, %v581_v11  ;;  %v588_v23 = vsel %vm582_vm15, %v581_v11, 0.0 }
 0x2ad   : > { %674 = vrot.lane.b32.xlu1 %v610_v21, %s1245_s13  ;;  %v1081_v12 = vpack.i.bf16 %v588_v23, %v1539_v22  ;;  %v600_v36 = vmul.f32 %v595_v31, %v1539_v22  ;;  %v601_v37 = vmul.f32 %v594_v9, %v588_v23  ;;  %v590_v0 = vmul.f32 %v1539_v22, %v1410_v14 }
 0x2af   : > { %1082 = vrot.lane.b32.xlu0 %v1081_v12, %s1239_s18  ;;  %v605_v17 = vpop.permute.xlu1 %604  ;;  %v1091_v41 = vpack.i.bf16 %v601_v37, %v600_v36 }
 0x2b0   : > { %v606_v26 = vsel %vm335_vm3, %v603_v18, %v605_v17  ;;  %v612_v27 = vmul.f32 %v605_v17, %v588_v23 }
 0x2b1   : > { %v611_v28 = vmul.f32 %v606_v26, %v1539_v22  ;;  %697 = vrot.lane.b32.xlu1 %v621_v25, %s1244_s12 }
 0x2b3   : > { %v1096_v29 = vpack.i.bf16 %v612_v27, %v611_v28  ;;  %1087 = vrot.lane.b32.xlu0 %v1081_v12, %s1240_s20  ;;  %v616_v30 = vpop.permute.xlu1 %615 }
 0x2b4   : > { %v617_v32 = vsel %vm344_vm2, %v614_v24, %v616_v30  ;;  %v623_v33 = vmul.f32 %v616_v30, %v588_v23 }
 0x2b5   : > { %v622_v34 = vmul.f32 %v617_v32, %v1539_v22  ;;  %1097 = vrot.lane.b32.xlu1 %v1096_v29, %s1245_s13 }
 0x2b7   : > { %v1101_v38 = vpack.i.bf16 %v623_v33, %v622_v34  ;;  %661 = vrot.lane.b32.xlu0 %v599_v35, %s1242_s25  ;;  %v627_v39 = vpop.permute.xlu1 %626 }
 0x2b8   : > { %v628_v42 = vsel %vm353_vm1, %v625_v40, %v627_v39  ;;  %v634_v44 = vmul.f32 %v627_v39, %v588_v23 }
 0x2b9   : > { %1102 = vrot.lane.b32.xlu1 %v1101_v38, %s1244_s12  ;;  %v633_v43 = vmul.f32 %v628_v42, %v1539_v22  ;;  %s954_s12 = sshll.u32 %s1315_s9, 7  ;;  %s1250_s9 = smov [#allocation7]  }
 0x2ba   : > { %s1610_s24 = scalar_lea.hbm %s1661_s7, %s954_s12  ;;  %s1166_s19 = sshll.u32 %s1250_s9, 4  ;;  %s1167_s19 = int_to_ptr.vmem [resolvable:$false] %s1166_s19 }
 0x2bb   : > { %1092 = vrot.lane.b32.xlu0 %v1091_v41, %s1242_s25  ;;  %v638_v46 = vpop.permute.xlu1 %637  ;;  %v1111_v48 = vpack.i.bf16 %v634_v44, %v633_v43  ;;  %s943_s25 = sshll.u32 %s1393_s28, 3  ;;  %s1168_s21 = scalar_lea.vmem %s1167_s19, 256 }
 0x2bc   : > { %v639_v49 = vsel %vm362_vm4, %v636_v47, %v638_v46  ;;  %v645_v50 = vmul.f32 %v638_v46, %v588_v23  ;;  %s274_s13 = scalar_lea.vmem [#allocation7], %s943_s25 }
 0x2bd   : > { %1107 = vrot.lane.b32.xlu1 %v1081_v12, %s1241_s22  ;;  %v644_v51 = vmul.f32 %v639_v49, %v1539_v22 }
 0x2bf   : > { %710 = vrot.lane.b32.xlu0 %v632_v45, %s1671_s26 }
 0x2c1   : > { %720 = vrot.lane.b32.xlu1 %v1532_v20, %s1241_s22  ;;  %s825_s22 = sld [smem:[#allocation3]] }
 0x2c3   : > { %1112 = vrot.lane.b32.xlu0 %v1111_v48, %s1671_s26  ;;  %s854_s26 = scalar_lea.sflag [#allocation6], %s1393_s28 }
 0x2c5   : > { %737 = vrot.lane.b32.xlu1 %v645_v50, %s1246_s23 }
 0x2c7   : > { %735 = vrot.lane.b32.xlu0 %v644_v51, %s1246_s23  ;;  %v743_v51 = vld [vmem:[%s1659_s5] sm:$0xf] }
 0x2c9   : > { %747 = vperm.xlu1 %1116, %v744_v52  }
 0x2cb   : > { %733 = vrot.lane.b32.xlu0 %v643_v55, %s1246_s23  ;;  %v827_v55 = vstv %s825_s22  ;;  %s868_s23 = sshll.u32 %s274_s13, 4  ;;  %s1612_s23 = int_to_ptr.vmem [resolvable:$true] %s868_s23 }
 0x2cc   : > { %s1162_s27 = scalar_lea.vmem %s1612_s23, 128  ;;  %p1169_p10 = scmp.lt.s32.totalorder %s1612_s23, %s1167_s19 }
 0x2cd   : > { %838 = vrot.lane.b32.xlu1 %v835_v56, %s1240_s20  ;;  %p1163_p11 = scmp.ne.s32.totalorder %s1612_s23, %s1162_s27  ;;  %p1170_p1 = scmp.lt.s32.totalorder %s1168_s21, %s1162_s27 }
 0x2cf   : > { %836 = vrot.lane.b32.xlu0 %v831_v54, %s1240_s20  ;;  %p1164_p3 = pnand %p1163_p11, %p1672_p2  ;;  %p1171_p7 = por %p1170_p1, %p1169_p10 }
 0x2d1   : > { %p1165_p4 = pneg %p1164_p3 }
 0x2d3   : > { %840 = vrot.lane.b32.xlu0 %v832_v57, %s1240_s20  ;;  %p1172_p9 = pnand %p1171_p7, %p1165_p4 }
 0x31b   : > { %v649_v58 = vpop.permute.xlu1 %648  ;;  %v685_v59 = vpop.permute.xlu0 %684 }
 0x31f   : > { %v675_v60 = vpop.permute.xlu1 %674 }
 0x321   : > { %v1083_v61 = vpop.permute.xlu0 %1082 }
 0x322   : > { %v1085_v62 = vunpack.i.h.bf16 %v1083_v61  ;;  %v1084_v19 = vunpack.i.l.bf16 %v1083_v61 }
 0x323   : > { %v698_v63 = vpop.permute.xlu1 %697 }
 0x324   : > { %v655_v2 = vsel %vm381_vm5, %v1084_v19, %v1085_v62  ;;  %v654_v3 = vsel %vm381_vm5, %v649_v58, %v1084_v19 }
 0x325   : > { %v1088_v15 = vpop.permute.xlu0 %1087  ;;  %v963_v4 = vpack.c.bf16 %v655_v2, %v590_v0  ;;  %v965_v5 = vpack.c.bf16 %v654_v3, %v589_v1 }
 0x326   : > { %v1090_v11 = vunpack.i.h.bf16 %v1088_v15  ;;  %v1089_v21 = vunpack.i.l.bf16 %v1088_v15 }
 0x327   : > { %964 = vmatprep.subr.bf16.mxu1 %v963_v4  ;;  %v1098_v6 = vpop.permute.xlu1 %1097 }
 0x328   : > { %966 = vmatpush1.bf16.msra.mxu1 %v965_v5  ;;  %v1100_v8 = vunpack.i.h.bf16 %v1098_v6  ;;  %v1099_v9 = vunpack.i.l.bf16 %v1098_v6  ;;  %v691_v29 = vsel %vm422_vm12, %v1089_v21, %v1090_v11  ;;  %v690_v36 = vsel %vm422_vm12, %v685_v59, %v1089_v21 }
 0x329   : > { %v662_v7 = vpop.permute.xlu0 %661 }
 0x32a   : > { %v681_v23 = vsel %vm410_vm6, %v1099_v9, %v1100_v8  ;;  %v680_v17 = vsel %vm410_vm6, %v675_v60, %v1099_v9 }
 0x32b   : > { %v1103_v10 = vpop.permute.xlu1 %1102 }
 0x32c   : > { %v1105_v16 = vunpack.i.h.bf16 %v1103_v10  ;;  %v1104_v18 = vunpack.i.l.bf16 %v1103_v10 }
 0x32d   : > { %v1093_v14 = vpop.permute.xlu0 %1092 }
 0x32e   : > { %v1095_v13 = vunpack.i.h.bf16 %v1093_v14  ;;  %v1094_v20 = vunpack.i.l.bf16 %v1093_v14  ;;  %v704_v25 = vsel %vm437_vm10, %v1104_v18, %v1105_v16  ;;  %v703_v31 = vsel %vm437_vm10, %v698_v63, %v1104_v18 }
 0x32f   : > { %v1108_v22 = vpop.permute.xlu1 %1107  ;;  %v971_v30 = vpack.c.bf16 %v704_v25, %v691_v29  ;;  %v973_v39 = vpack.c.bf16 %v703_v31, %v690_v36 }
 0x330   : > { %v668_v12 = vsel %vm395_vm9, %v1094_v20, %v1095_v13  ;;  %v667_v24 = vsel %vm395_vm9, %v662_v7, %v1094_v20  ;;  %v1110_v32 = vunpack.i.h.bf16 %v1108_v22  ;;  %v1109_v33 = vunpack.i.l.bf16 %v1108_v22 }
 0x331   : > { %v711_v26 = vpop.permute.xlu0 %710  ;;  %v967_v27 = vpack.c.bf16 %v681_v23, %v668_v12  ;;  %v969_v28 = vpack.c.bf16 %v680_v17, %v667_v24 }
 0x332   : > { %v727_v42 = vsel %vm462_vm8, %v1109_v33, %v1110_v32 }
 0x333   : > { %968 = vmatprep.subr.bf16.mxu1 %v967_v27  ;;  %v721_v34 = vpop.permute.xlu1 %720 }
 0x334   : > { %970 = vmatpush1.bf16.msra.mxu1 %v969_v28  ;;  %v726_v40 = vsel %vm462_vm8, %v721_v34, %v1109_v33 }
 0x335   : > { %v1113_v35 = vpop.permute.xlu0 %1112  ;;  %972 = vmatprep.subr.bf16.mxu1 %v971_v30 }
 0x336   : > { %v1115_v37 = vunpack.i.h.bf16 %v1113_v35  ;;  %v1114_v38 = vunpack.i.l.bf16 %v1113_v35 }
 0x337   : > { %v738_v47 = vpop.permute.xlu1 %737 }
 0x338   : > { %974 = vmatpush1.bf16.msra.mxu1 %v973_v39  ;;  %v717_v41 = vsel %vm451_vm11, %v1114_v38, %v1115_v37  ;;  %v716_v43 = vsel %vm451_vm11, %v711_v26, %v1114_v38 }
 0x339   : > { %v736_v44 = vpop.permute.xlu0 %735  ;;  %v975_v45 = vpack.c.bf16 %v727_v42, %v717_v41  ;;  %v977_v46 = vpack.c.bf16 %v726_v40, %v716_v43 }
 0x33a   : > { %v740_v48 = vsel %vm476_vm13, %v736_v44, %v738_v47 }
 0x33b   : > { %976 = vmatprep.subr.bf16.mxu1 %v975_v45 }
 0x33c   : > { %978 = vmatpush1.bf16.msra.mxu1 %v977_v46 }
 0x33d   : > { %v734_v49 = vpop.permute.xlu0 %733  ;;  %770 = vmatprep.subr.mxu1 %v740_v48 }
 0x33e   : > { %v739_v50 = vsel %vm476_vm13, %v734_v49, %v736_v44 }
 0x340   : > { %771 = vmatpush1.msra.mxu1 %v739_v50 }
 0x341   : > { %947 = vmatmul.mubr.msk.f32.vlgmr.msra.gmra.mrb[0].mxu1 %vm750_vm0, %v743_v51  ;;  %v837_v52 = vpop.permute.xlu0 %836 }
 0x345   : > { %v841_v56 = vpop.permute.xlu0 %840 }
 0x348   : > { %v748_v53 = vpop.permute.xlu1 %747 }
 0x34c   : > { %v839_v57 = vpop.permute.xlu1 %838 }
 0x34d   : > { %v843_v62 = vsel %vm422_vm12, %v839_v57, %v841_v56  ;;  %v842_v19 = vsel %vm422_vm12, %v837_v52, %v839_v57 }
 0x414   : > { %v820_v54 = vpop.f32.mrb[0].mxu1 }
 0x415   : > { %v821_v58 = vadd.f32 %v820_v54, %v748_v53  ;;  %v822_v59 = vpop.f32.mrb[1].mxu1 }
 0x416   : > { %v823_v60 = vadd.f32 %v822_v59, %v748_v53 }
 0x417   : > { %v828_v61 = vmul.f32 %v827_v55, %v821_v58 }
 0x418   : > { %v829_v63 = vmul.f32 %v827_v55, %v823_v60 }
 0x419   : > { %v846_v0 = vadd.f32 %v842_v19, %v828_v61 }
 0x41a   : > { %v847_v1 = vadd.f32 %v843_v62, %v829_v63 }
 0x41c   : > { %v850_v2 = vcombine.low %v846_v0, %v847_v1 }
 0x41e   : > { %852 = vst [vmem:[%s274_s13] sm:$0xff] %v850_v2 }
 0x41f   : > { %1175 = shalt.err (!%p1172_p9)
}
 0x420   : > { %s1176_s28 = scalar_lea.hbm %s1610_s24, 128  ;;  %s1180_s22 = scalar_lea.hbm %s1661_s7, 256 }
 0x421   : > { %p1177_p12 = scmp.ne.s32.totalorder %s1610_s24, %s1176_s28  ;;  %p1181_p5 = scmp.lt.u32.totalorder %s1610_s24, %s1661_s7 }
 0x422   : > { %p1182_p6 = scmp.lt.u32.totalorder %s1180_s22, %s1176_s28  ;;  %p1184_p11 = scmp.lt.u32.totalorder %s1176_s28, %s1610_s24 }
 0x423   : > { %p1178_p13 = pnand %p1177_p12, %p1672_p2 }
 0x424   : > { %p1183_p8 = por %p1182_p6, %p1181_p5 }
 0x425   : > { %p1179_p0 = pneg %p1178_p13 }
 0x426   : > { %p1185_p3 = por %p1184_p11, %p1183_p8 }
 0x428   : > { %p1186_p4 = pnand %p1185_p3, %p1179_p0 }
 0x42a   : > { %1189 = shalt.err (!%p1186_p4)
}
 0x42b   : > { %984 = dma.vmem_to_hbm [thread:$0]  (%p1672_p2), %s1612_s23, 128, %s1610_s24, %s854_s26  }
 0x42c PF: > { %s880_s13 = sand.u32 1, %s1218_s29   ;;  %p1673_p10 = scmp.ne.s32.totalorder %s1667_s17, 0 }
 0x42d   : > { %p1674_p1 = scmp.ge.s32.totalorder %s1230_s8, 2  ;;  %s881_s15 = scalar_lea.sflag [#allocation6], %s880_s13 }
 0x42f   : > { %p991_p7 = pnand %p1674_p1, %p1673_p10 }
 0x431   : > { %1213 = dma.done.wait (!%p991_p7), %s881_s15, 128  }
 0x432   : > { %1215 = vsyncadd (!%p991_p7), %s881_s15, 4294967168  ;;  %p26_p9 = scmp.ge.s32.totalorder %s1319_s11, 4   ;;  %s1675_s29 = smov %s1222_s0 }
 0x433   : > { %s1676_s0 = smov %s1226_s30  ;;  %s1677_s30 = smov %s1331_s14 }
 0x434   : > { %s1678_s8 = smov %s1319_s11  ;;  %28 = sbr.rel (!%p26_p9) target bundleno = 20 (0x14), region = 89 }
 0x43b   :  { %886 = vsyncpa [#allocation5], 1 }
 0x43c   :  { %888 = vsyncpa [#allocation5 + $0x1], 1 }
 0x43d   :  { %889 = vsyncpa [#allocation6], 1 }
 0x43e   :  { %891 = vsyncpa [#allocation6 + $0x1], 1 }

</bundles_post_ra>
